<compile_context>
chip_gen: v5e
topology: v5e:2x2
jax: 0.10.0
libtpu: 0.0.40
codegen_flags: <defaults>
</compile_context>

<pallas_src>
import jax
import jax.numpy as jnp
from jax.experimental import pallas as pl
from jax.experimental.pallas import tpu as pltpu


def mlp_kernel(w1_ref, b1_ref, w2_ref, b2_ref, x_ref, o_ref):
    # w1_ref: (6,) SMEM  -- row-major (in=2, out=3): w1[i, j] = w1_ref[i*3 + j]
    # b1_ref: (3,) SMEM
    # w2_ref: (3,) SMEM  -- w2[j, 0] = w2_ref[j]
    # b2_ref: (1,) SMEM
    # x_ref : (2, TN) VMEM lane-dense (features x batch)
    # o_ref : (1, TN) VMEM lane-dense
    x0 = x_ref[0:1, :]  # (1, TN)
    x1 = x_ref[1:2, :]  # (1, TN)

    y = jnp.full_like(x0, b2_ref[0])
    # Hidden layer (3 units): h_j = sigmoid(w1[0,j]*x0 + w1[1,j]*x1 + b1[j])
    # Output layer: y = sum_j w2[j]*h_j + b2  -- all pure VPU/EUP work.
    for j in range(3):
        h_j = jax.nn.sigmoid(w1_ref[j] * x0 + w1_ref[3 + j] * x1 + b1_ref[j])
        y = y + w2_ref[j] * h_j

    o_ref[...] = y.astype(o_ref.dtype)


def mlp_forward(x, w1, b1, w2, b2, *, tn=1024):
    """x: (N, 2) f32; w1: (2, 3); b1: (3,); w2: (3, 1); b2: (1,). Returns (N, 1)."""
    N, F = x.shape
    assert F == 2
    assert tn % 128 == 0

    n_blocks = pl.cdiv(N, tn)
    n_pad = n_blocks * tn

    # Lane-dense relayout + padding done in the wrapper (layout plumbing, not compute).
    x_t = jnp.zeros((2, n_pad), jnp.float32).at[:, :N].set(x.T.astype(jnp.float32))

    w1f = w1.reshape(-1).astype(jnp.float32)   # (6,)
    b1f = b1.reshape(-1).astype(jnp.float32)   # (3,)
    w2f = w2.reshape(-1).astype(jnp.float32)   # (3,)
    b2f = b2.reshape(-1).astype(jnp.float32)   # (1,)

    smem_spec = pl.BlockSpec(memory_space=pltpu.MemorySpace.SMEM)

    out = pl.pallas_call(
        mlp_kernel,
        out_shape=jax.ShapeDtypeStruct((1, n_pad), jnp.float32),
        grid_spec=pltpu.PrefetchScalarGridSpec(
            num_scalar_prefetch=0,
            grid=(n_blocks,),
            in_specs=[
                smem_spec,                                  # w1 (6,) in SMEM
                smem_spec,                                  # b1 (3,) in SMEM
                smem_spec,                                  # w2 (3,) in SMEM
                smem_spec,                                  # b2 (1,) in SMEM
                pl.BlockSpec((2, tn), lambda i: (0, i)),    # x tile, lane-dense
            ],
            out_specs=pl.BlockSpec((1, tn), lambda i: (0, i)),
        ),
        compiler_params=pltpu.CompilerParams(
            dimension_semantics=("parallel",),  # batch axis shards across TCs (v7x)
        ),
    )(w1f, b1f, w2f, b2f, x_t)

    return out[0, :N].reshape(N, 1)


def init_params(key):
    # Deterministic init mimicking torch.nn.Linear: U(-1/sqrt(fan_in), 1/sqrt(fan_in))
    k1, k2, k3, k4 = jax.random.split(key, 4)
    bound1 = 1.0 / jnp.sqrt(2.0)
    w1 = jax.random.uniform(k1, (2, 3), jnp.float32, -bound1, bound1)
    b1 = jax.random.uniform(k2, (3,), jnp.float32, -bound1, bound1)
    bound2 = 1.0 / jnp.sqrt(3.0)
    w2 = jax.random.uniform(k3, (3, 1), jnp.float32, -bound2, bound2)
    b2 = jax.random.uniform(k4, (1,), jnp.float32, -bound2, bound2)
    return w1, b1, w2, b2


if __name__ == "__main__":
    key = jax.random.PRNGKey(0)
    kx, kp = jax.random.split(key)
    N = 16  # small demo batch; arbitrary N supported via cdiv + padding
    x = jax.random.normal(kx, (N, 2), jnp.float32)
    w1, b1, w2, b2 = init_params(kp)

    out = mlp_forward(x, w1, b1, w2, b2, tn=256)
    jax.block_until_ready(out)

    # Reference check in plain JAX
    ref = jax.nn.sigmoid(x @ w1 + b1[None, :]) @ w2 + b2[None, :]
    assert out.shape == (N, 1)
    assert jnp.allclose(out, ref, atol=1e-5, rtol=1e-5)

    print("KERNEL_OK")
</pallas_src>

<mosaic_0001>
module attributes {stable_mosaic.version = 11 : i64} {
  func.func @mlp_kernel(%arg0: i32, %arg1: memref<6xf32, #tpu.memory_space<smem>>, %arg2: memref<3xf32, #tpu.memory_space<smem>>, %arg3: memref<3xf32, #tpu.memory_space<smem>>, %arg4: memref<1xf32, #tpu.memory_space<smem>>, %arg5: memref<2x256xf32, #tpu.memory_space<vmem>>, %arg6: memref<1x256xf32, #tpu.memory_space<vmem>>) attributes {dimension_semantics = [#tpu.dimension_semantics<parallel>], iteration_bounds = array<i64: 1>, scalar_prefetch = 0 : i64, scratch_operands = 0 : i64, tpu.core_type = #tpu.core_type<tc>, window_params = [{transform_indices = @transform_0, window_bounds = array<i64: 6>}, {transform_indices = @transform_1, window_bounds = array<i64: 3>}, {transform_indices = @transform_2, window_bounds = array<i64: 3>}, {transform_indices = @transform_3, window_bounds = array<i64: 1>}, {transform_indices = @transform_4, window_bounds = array<i64: 2, 256>}, {transform_indices = @transform_5, window_bounds = array<i64: 1, 256>}]} {
    %c0 = arith.constant 0 : index
    %c0_0 = arith.constant 0 : index
    %0 = vector.load %arg5[%c0, %c0_0] : memref<2x256xf32, #tpu.memory_space<vmem>>, vector<1x256xf32>
    %c1 = arith.constant 1 : index
    %c0_1 = arith.constant 0 : index
    %1 = vector.load %arg5[%c1, %c0_1] : memref<2x256xf32, #tpu.memory_space<vmem>>, vector<1x256xf32>
    %c0_2 = arith.constant 0 : index
    %2 = memref.load %arg4[%c0_2] : memref<1xf32, #tpu.memory_space<smem>>
    %3 = vector.broadcast %2 : f32 to vector<1x256xf32>
    %c0_3 = arith.constant 0 : index
    %4 = memref.load %arg1[%c0_3] : memref<6xf32, #tpu.memory_space<smem>>
    %5 = vector.broadcast %4 : f32 to vector<1x256xf32>
    %6 = arith.mulf %5, %0 : vector<1x256xf32>
    %c3 = arith.constant 3 : index
    %7 = memref.load %arg1[%c3] : memref<6xf32, #tpu.memory_space<smem>>
    %8 = vector.broadcast %7 : f32 to vector<1x256xf32>
    %9 = arith.mulf %8, %1 : vector<1x256xf32>
    %10 = arith.addf %6, %9 : vector<1x256xf32>
    %c0_4 = arith.constant 0 : index
    %11 = memref.load %arg2[%c0_4] : memref<3xf32, #tpu.memory_space<smem>>
    %12 = vector.broadcast %11 : f32 to vector<1x256xf32>
    %13 = arith.addf %10, %12 : vector<1x256xf32>
    %14 = arith.negf %13 : vector<1x256xf32>
    %15 = math.exp %14 : vector<1x256xf32>
    %cst = arith.constant 1.000000e+00 : f32
    %16 = vector.broadcast %cst : f32 to vector<1x256xf32>
    %17 = arith.addf %16, %15 : vector<1x256xf32>
    %18 = arith.divf %16, %17 : vector<1x256xf32>
    %c0_5 = arith.constant 0 : index
    %19 = memref.load %arg3[%c0_5] : memref<3xf32, #tpu.memory_space<smem>>
    %20 = vector.broadcast %19 : f32 to vector<1x256xf32>
    %21 = arith.mulf %20, %18 : vector<1x256xf32>
    %22 = arith.addf %3, %21 : vector<1x256xf32>
    %c1_6 = arith.constant 1 : index
    %23 = memref.load %arg1[%c1_6] : memref<6xf32, #tpu.memory_space<smem>>
    %24 = vector.broadcast %23 : f32 to vector<1x256xf32>
    %25 = arith.mulf %24, %0 : vector<1x256xf32>
    %c4 = arith.constant 4 : index
    %26 = memref.load %arg1[%c4] : memref<6xf32, #tpu.memory_space<smem>>
    %27 = vector.broadcast %26 : f32 to vector<1x256xf32>
    %28 = arith.mulf %27, %1 : vector<1x256xf32>
    %29 = arith.addf %25, %28 : vector<1x256xf32>
    %c1_7 = arith.constant 1 : index
    %30 = memref.load %arg2[%c1_7] : memref<3xf32, #tpu.memory_space<smem>>
    %31 = vector.broadcast %30 : f32 to vector<1x256xf32>
    %32 = arith.addf %29, %31 : vector<1x256xf32>
    %33 = arith.negf %32 : vector<1x256xf32>
    %34 = math.exp %33 : vector<1x256xf32>
    %cst_8 = arith.constant 1.000000e+00 : f32
    %35 = vector.broadcast %cst_8 : f32 to vector<1x256xf32>
    %36 = arith.addf %35, %34 : vector<1x256xf32>
    %37 = arith.divf %35, %36 : vector<1x256xf32>
    %c1_9 = arith.constant 1 : index
    %38 = memref.load %arg3[%c1_9] : memref<3xf32, #tpu.memory_space<smem>>
    %39 = vector.broadcast %38 : f32 to vector<1x256xf32>
    %40 = arith.mulf %39, %37 : vector<1x256xf32>
    %41 = arith.addf %22, %40 : vector<1x256xf32>
    %c2 = arith.constant 2 : index
    %42 = memref.load %arg1[%c2] : memref<6xf32, #tpu.memory_space<smem>>
    %43 = vector.broadcast %42 : f32 to vector<1x256xf32>
    %44 = arith.mulf %43, %0 : vector<1x256xf32>
    %c5 = arith.constant 5 : index
    %45 = memref.load %arg1[%c5] : memref<6xf32, #tpu.memory_space<smem>>
    %46 = vector.broadcast %45 : f32 to vector<1x256xf32>
    %47 = arith.mulf %46, %1 : vector<1x256xf32>
    %48 = arith.addf %44, %47 : vector<1x256xf32>
    %c2_10 = arith.constant 2 : index
    %49 = memref.load %arg2[%c2_10] : memref<3xf32, #tpu.memory_space<smem>>
    %50 = vector.broadcast %49 : f32 to vector<1x256xf32>
    %51 = arith.addf %48, %50 : vector<1x256xf32>
    %52 = arith.negf %51 : vector<1x256xf32>
    %53 = math.exp %52 : vector<1x256xf32>
    %cst_11 = arith.constant 1.000000e+00 : f32
    %54 = vector.broadcast %cst_11 : f32 to vector<1x256xf32>
    %55 = arith.addf %54, %53 : vector<1x256xf32>
    %56 = arith.divf %54, %55 : vector<1x256xf32>
    %c2_12 = arith.constant 2 : index
    %57 = memref.load %arg3[%c2_12] : memref<3xf32, #tpu.memory_space<smem>>
    %58 = vector.broadcast %57 : f32 to vector<1x256xf32>
    %59 = arith.mulf %58, %56 : vector<1x256xf32>
    %60 = arith.addf %41, %59 : vector<1x256xf32>
    %c0_13 = arith.constant 0 : index
    %c0_14 = arith.constant 0 : index
    %61 = vector.load %arg6[%c0_13, %c0_14] : memref<1x256xf32, #tpu.memory_space<vmem>>, vector<1x256xf32>
    tpu.vector_store %arg6[%c0_13, %c0_14], %60 {strides = array<i32>} : memref<1x256xf32, #tpu.memory_space<vmem>>, vector<1x256xf32>,
    return
  }
  func.func @transform_0(%arg0: i32) -> i32 {
    %c0_i32 = arith.constant 0 : i32
    %c0_i32_0 = arith.constant 0 : i32
    return %c0_i32 : i32
  }
  func.func @transform_1(%arg0: i32) -> i32 {
    %c0_i32 = arith.constant 0 : i32
    %c0_i32_0 = arith.constant 0 : i32
    return %c0_i32 : i32
  }
  func.func @transform_2(%arg0: i32) -> i32 {
    %c0_i32 = arith.constant 0 : i32
    %c0_i32_0 = arith.constant 0 : i32
    return %c0_i32 : i32
  }
  func.func @transform_3(%arg0: i32) -> i32 {
    %c0_i32 = arith.constant 0 : i32
    %c0_i32_0 = arith.constant 0 : i32
    return %c0_i32 : i32
  }
  func.func @transform_4(%arg0: i32) -> (i32, i32) {
    %c0_i32 = arith.constant 0 : i32
    %c0_i32_0 = arith.constant 0 : i32
    return %c0_i32, %arg0 : i32, i32
  }
  func.func @transform_5(%arg0: i32) -> (i32, i32) {
    %c0_i32 = arith.constant 0 : i32
    %c0_i32_0 = arith.constant 0 : i32
    return %c0_i32, %arg0 : i32, i32
  }
}

</mosaic_0001>

<bundles_post_ra>
// kernel: tpu_custom_call.1
= control target key start
LH: loop header
LB: loop body
LE: loop exit
PB: predicated region body
PF: predicated region fallthrough
CT: control target
= control target key end

     0   :  { %11 = vsyncpa [#allocation5], 0  ;;  %s356_s0 = inlined_call_operand.hbm [shape: f32[6], index: 0, kind: input, shape index: {}]   ;;  %s357_s1 = inlined_call_operand.hbm [shape: f32[3], index: 1, kind: input, shape index: {}]   ;;  %s358_s2 = inlined_call_operand.hbm [shape: f32[3], index: 2, kind: input, shape index: {}]   ;;  %s359_s3 = inlined_call_operand.<no memory space> [shape: f32[1], index: 3, kind: input, shape index: {}]   ;;  %s360_s4 = inlined_call_operand.vmem [shape: f32[2,256], index: 4, kind: input, shape index: {}]   ;;  %s361_s5 = inlined_call_operand.hbm [shape: f32[1,256], index: 5, kind: output, shape index: {}]  }
   0x1   :  { %12 = vsyncpa [#allocation7], 0  ;;  %s28_s20 = sshll.u32 %s357_s1, 4  ;;  %s29_s20 = int_to_ptr.hbm [resolvable:$true] %s28_s20 }
   0x2   :  { %13 = vsyncpa [#allocation4], 0  ;;  %s19_s23 = sshll.u32 %s356_s0, 4  ;;  %s280_s24 = smov [#allocation6]   ;;  %s20_s23 = int_to_ptr.hbm [resolvable:$true] %s19_s23 }
   0x3   :  { %31 = dma.hbm_to_smem %s29_s20, 16, %s280_s24, [#allocation7]  }
   0x4   :  { %s281_s25 = smov [#allocation3]   ;;  %s37_s28 = sshll.u32 %s358_s2, 4  ;;  %s38_s28 = int_to_ptr.hbm [resolvable:$true] %s37_s28 }
   0x5   :  { %22 = dma.hbm_to_smem %s20_s23, 16, %s281_s25, [#allocation5]  }
   0x6   :  { %s282_s29 = smov [#allocation8]  }
   0x7   :  { %40 = dma.hbm_to_smem %s38_s28, 16, %s282_s29, [#allocation7]  }
   0x8   :  { %274 = dma.done.wait [#allocation5], 16  }
   0x9   :  { %275 = vsyncadd [#allocation5], 4294967280 }
   0xa   :  { %276 = dma.done.wait [#allocation7], 32  }
   0xb   :  { %277 = vsyncadd [#allocation7], 4294967264 }
   0xc   :  { %57 = sfence }
   0xd   :  { %s63_s1 = sld [smem:[#allocation3]]  ;;  %v58_v0 = vld [vmem:[%s360_s4] ss:$2 sm:$0x3]  ;;  %v62_v47 = vstv %s359_s3  ;;  %s283_s3 = smov [#allocation9]  }
   0xe   :  { %s186_s30 = sld [smem:[#allocation3 + $0x3]]  ;;  %v185_v1 = vld [vmem:[%s360_s4 + $0x1] ss:$2 sm:$0x3]  ;;  %s172_s19 = sshll.u32 %s283_s3, 4  ;;  %s173_s19 = int_to_ptr.vmem [resolvable:$true] %s172_s19 }
   0xf   :  { %s70_s0 = sld [smem:[#allocation6]]  ;;  %s174_s22 = sshll.u32 %s361_s5, 4  ;;  %s175_s22 = int_to_ptr.hbm [resolvable:$true] %s174_s22 }
  0x10   :  { %s188_s8 = sld [smem:[#allocation3 + $0x1]] }
  0x11   :  { %s189_s2 = sld [smem:[#allocation3 + $0x4]] }
  0x12   :  { %s190_s11 = sld [smem:[#allocation6 + $0x1]] }
  0x13   :  { %v64_v2 = vstv %s63_s1  ;;  %s193_s12 = sld [smem:[#allocation3 + $0x2]] }
  0x14   :  { %v65_v3 = vmul.f32 %v64_v2, %v58_v0  ;;  %v67_v4 = vstv %s186_s30  ;;  %s194_s13 = sld [smem:[#allocation3 + $0x5]] }
  0x15   :  { %v68_v5 = vmul.f32 %v185_v1, %v67_v4  ;;  %v71_v6 = vstv %s70_s0  ;;  %s195_s14 = sld [smem:[#allocation6 + $0x2]] }
  0x16   :  { %v97_v8 = vstv %s188_s8  ;;  %s329_s4 = sld [smem:[#allocation8]] }
  0x17   :  { %v69_v7 = vadd.f32 %v68_v5, %v65_v3  ;;  %v98_v9 = vmul.f32 %v97_v8, %v58_v0  ;;  %v100_v10 = vstv %s189_s2  ;;  %s331_s15 = sld [smem:[#allocation8 + $0x1]]  ;;  %v162_v5 = vlaneseq }
  0x18   :  { %v101_v12 = vmul.f32 %v185_v1, %v100_v10  ;;  %v104_v13 = vstv %s190_s11  ;;  %s345_s18 = sld [smem:[#allocation8 + $0x2]] }
  0x19   :  { %v72_v11 = vadd.f32 %v71_v6, %v69_v7  ;;  %v130_v16 = vstv %s193_s12  ;;  %vm164_vm12 = vcmp.lt.s32.totalorder %v162_v5, 256 }
  0x1a   :  { %v102_v15 = vadd.f32 %v101_v12, %v98_v9  ;;  %v131_v17 = vmul.f32 %v130_v16, %v58_v0  ;;  %v133_v18 = vstv %s194_s13 }
  0x1b   :  { %v187_v14 = vmul.f32 -1.442695, %v72_v11  ;;  %v134_v20 = vmul.f32 %v185_v1, %v133_v18  ;;  %v137_v21 = vstv %s195_s14 }
  0x1c   :  { %v105_v19 = vadd.f32 %v104_v13, %v102_v15  ;;  %v93_v48 = vstv %s329_s4 }
  0x1d   :  { %202 = vpow2.f32 %v187_v14  ;;  %v135_v23 = vadd.f32 %v134_v20, %v131_v17  ;;  %v126_v60 = vstv %s331_s15 }
  0x1e   :  { %v191_v22 = vmul.f32 -1.442695, %v105_v19  ;;  %v159_v4 = vstv %s345_s18 }
  0x1f   :  { %v138_v24 = vadd.f32 %v137_v21, %v135_v23 }
  0x20   :  { %204 = vpow2.f32 %v191_v22 }
  0x21   :  { %v196_v26 = vmul.f32 -1.442695, %v138_v24 }
  0x23   :  { %v203_v25 = vpop.eup %202  ;;  %206 = vpow2.f32 %v196_v26 }
  0x24   :  { %v76_v27 = vadd.f32 1.0, %v203_v25 }
  0x26   :  { %208 = vrcp.f32 %v76_v27  ;;  %v205_v28 = vpop.eup %204  ;;  %v86_v34 = vand.u32 2147483647, %v76_v27  ;;  %v88_v35 = vand.u32 2147483648, %v76_v27  ;;  %vm82_vm0 = vweird.f32 %v76_v27 }
  0x27   :  { %v109_v29 = vadd.f32 1.0, %v205_v28 }
  0x28   :  { %vm87_vm3 = vcmp.eq.f32.partialorder %v86_v34, 8.507059e+37  ;;  %v89_v43 = vor.u32 1.1754944e-38, %v88_v35 }
  0x29   :  { %210 = vrcp.f32 %v109_v29  ;;  %v207_v30 = vpop.eup %206  ;;  %v119_v38 = vand.u32 2147483647, %v109_v29  ;;  %v121_v41 = vand.u32 2147483648, %v109_v29  ;;  %vm115_vm4 = vweird.f32 %v109_v29 }
  0x2a   :  { %v142_v32 = vadd.f32 1.0, %v207_v30 }
  0x2b   :  { %vm341_vm6 = vcmp.eq.f32.partialorder %v119_v38, 8.507059e+37  ;;  %v122_v52 = vor.u32 1.1754944e-38, %v121_v41 }
  0x2c   :  { %v209_v31 = vpop.eup %208  ;;  %212 = vrcp.f32 %v142_v32  ;;  %vm148_vm8 = vweird.f32 %v142_v32  ;;  %v152_v55 = vand.u32 2147483647, %v142_v32  ;;  %v154_v56 = vand.u32 2147483648, %v142_v32 }
  0x2d   :  { %v78_v33 = vmul.f32 %v209_v31, %v76_v27  ;;  %vm83_vm1 = vweird.f32 %v209_v31 }
  0x2e   :  { %vm333_vm2 = vmor %vm82_vm0, %vm83_vm1  ;;  %v155_v1 = vor.u32 1.1754944e-38, %v154_v56  ;;  %vm153_vm11 = vcmp.eq.f32.partialorder %v152_v55, 8.507059e+37 }
  0x2f   :  { %v79_v36 = vsub.f32 1.0, %v78_v33  ;;  %v211_v37 = vpop.eup %210 }
  0x30   :  { %v111_v40 = vmul.f32 %v211_v37, %v109_v29  ;;  %vm116_vm5 = vweird.f32 %v211_v37 }
  0x31   :  { %v80_v39 = vmul.f32 %v209_v31, %v79_v36  ;;  %vm117_vm7 = vmor %vm115_vm4, %vm116_vm5 }
  0x32   :  { %v112_v45 = vsub.f32 1.0, %v111_v40  ;;  %v213_v46 = vpop.eup %212 }
  0x33   :  { %v81_v44 = vadd.f32 %v209_v31, %v80_v39  ;;  %v144_v53 = vmul.f32 %v213_v46, %v142_v32  ;;  %vm149_vm9 = vweird.f32 %v213_v46 }
  0x34   :  { %v113_v51 = vmul.f32 %v211_v37, %v112_v45  ;;  %vm150_vm10 = vmor %vm148_vm8, %vm149_vm9 }
  0x35   :  { %v85_v50 = vsel %vm333_vm2, %v209_v31, %v81_v44  ;;  %v145_v59 = vsub.f32 1.0, %v144_v53 }
  0x36   :  { %v90_v54 = vsel %vm87_vm3, %v89_v43, %v85_v50  ;;  %v114_v58 = vadd.f32 %v211_v37, %v113_v51 }
  0x37   :  { %v94_v57 = vmul.f32 %v93_v48, %v90_v54  ;;  %v146_v63 = vmul.f32 %v213_v46, %v145_v59 }
  0x38   :  { %v118_v62 = vsel %vm117_vm7, %v211_v37, %v114_v58 }
  0x39   :  { %v95_v61 = vadd.f32 %v94_v57, %v62_v47  ;;  %v123_v0 = vsel %vm341_vm6, %v122_v52, %v118_v62  ;;  %v147_v3 = vadd.f32 %v213_v46, %v146_v63 }
  0x3a   :  { %v127_v2 = vmul.f32 %v126_v60, %v123_v0 }
  0x3b   :  { %v151_v7 = vsel %vm150_vm10, %v213_v46, %v147_v3 }
  0x3c   :  { %v128_v6 = vadd.f32 %v127_v2, %v95_v61  ;;  %v156_v8 = vsel %vm153_vm11, %v155_v1, %v151_v7 }
  0x3d   :  { %v160_v9 = vmul.f32 %v159_v4, %v156_v8 }
  0x3f   :  { %v161_v10 = vadd.f32 %v160_v9, %v128_v6 }
  0x41   :  { %166 = vst.msk [vmem:[#allocation9] sm:$0x3] %vm164_vm12, %v161_v10 }
  0x42   :  { %177 = dma.vmem_to_hbm [thread:$0]  %s173_s19, 32, %s175_s22, [#allocation4]  }
  0x43   :  { %278 = dma.done.wait [#allocation4], 32  }
  0x44   :  { %279 = vsyncadd [#allocation4], 4294967264 }
  0x45   :  { %182 = vsyncpa [#allocation4], 1 }
  0x46   :  { %183 = vsyncpa [#allocation5], 1 }
  0x47   :  { %184 = vsyncpa [#allocation7], 1 }

</bundles_post_ra>
